<compile_context>
chip_gen: v7x
topology: tpu7x:2x2x1
jax: 0.10.0
libtpu: 0.0.40
codegen_flags: <defaults>
</compile_context>

<pallas_src>
import functools

import jax
import jax.numpy as jnp
from jax.experimental import pallas as pl
from jax.experimental.pallas import tpu as pltpu

EPS = 1e-5


# ----------------------------------------------------------------------------
# Generation-aware VMEM / block budgets.
# ----------------------------------------------------------------------------
def _vmem_capacity_bytes():
    """Physical VMEM per TensorCore (128 MiB v5e/v6e, 64 MiB v7x)."""
    try:
        info = pltpu.get_tpu_info()
        for name in ("vmem_capacity_bytes", "vmem_size_bytes", "vmem_bytes"):
            v = getattr(info, name, None)
            if v:
                return int(v)
    except Exception:
        pass
    return 64 * 1024 * 1024  # conservative default (v7x per-TC)


_VMEM_CAP = _vmem_capacity_bytes()
_VMEM_LIMIT = (_VMEM_CAP * 3) // 4        # 96 MiB on v5e/v6e, 48 MiB on v7x
_APPLY_BLOCK_BYTES = _VMEM_LIMIT // 8     # input + output, each double-buffered
_STATS_BLOCK_BYTES = _VMEM_LIMIT // 4     # only the input tile is pipelined
# Whole-x-in-VMEM fused-path cutoff (x, z, and possible f32 temporaries).
_FUSED_X_F32_BYTES = max(_VMEM_LIMIT - (4 << 20), 0) // 4


# ----------------------------------------------------------------------------
# Tile selection (always (8,128)-legal).
# ----------------------------------------------------------------------------
def _pick_hw_tile(hw, max_hw):
    """Full HW if it fits the budget; else the largest 128-aligned divisor of
    HW; else fall back to full HW (block budget is advisory)."""
    if hw <= max_hw:
        return hw
    if hw % 128 == 0:
        t = (max_hw // 128) * 128
        while t >= 128:
            if hw % t == 0:
                return t
            t -= 128
    return hw


def _pick_row_tile(rows, max_rows):
    """Multiple-of-8 row tile <= max_rows (or full `rows` if it fits)."""
    if rows <= max_rows:
        return rows
    cap = max(8, (max_rows // 8) * 8)
    t = cap
    while t >= 8:
        if rows % t == 0:
            return t
        t -= 8
    # Non-dividing tile: ragged last block; all in-kernel reductions are
    # per-row, so out-of-range rows are simply dropped on write.
    return cap


# ----------------------------------------------------------------------------
# Kernels.
# ----------------------------------------------------------------------------
def _stats_kernel(x_ref, rm_ref, sum_ref, sq_ref):
    """x_ref: (tr, thw); rm_ref: (tr, 1) per-row running mean.
    Accumulate per-row sum(x - rm) and sum((x - rm)^2) (shifted for numerical
    stability).  Row axis is 'parallel' (distinct output blocks), H*W axis is
    the 'arbitrary' reduction axis."""
    @pl.when(pl.program_id(1) == 0)
    def _init():
        sum_ref[...] = jnp.zeros_like(sum_ref)
        sq_ref[...] = jnp.zeros_like(sq_ref)

    xc = x_ref[...].astype(jnp.float32) - rm_ref[...]
    sum_ref[...] += jnp.sum(xc, axis=1, keepdims=True)
    sq_ref[...] += jnp.sum(xc * xc, axis=1, keepdims=True)


def _apply_kernel(x_ref, ac_ref, o_ref):
    """z = a * x + c with per-row (a, c) packed in ac_ref: (tr, 2)."""
    ac = ac_ref[...]
    a = ac[:, 0:1]
    c = ac[:, 1:2]
    o_ref[...] = (x_ref[...].astype(jnp.float32) * a + c).astype(o_ref.dtype)


def _make_fused_kernel(inv_m, eps):
    """Single-pass training kernel for x that fits in VMEM: one HBM read of x,
    one HBM write of z (instead of two reads + one write)."""
    def kernel(x_ref, p_ref, z_ref, stats_ref):
        # x_ref: (N, C, HW);  p_ref: (6, C, 1) packed [a0, c0, s, rm, w, b].
        p = p_ref[...]
        a0, c0, s = p[0:1], p[1:2], p[2:3]
        rm, w, b = p[3:4], p[4:5], p[5:6]

        x = x_ref[...].astype(jnp.float32)
        xc = x - rm                                  # shifted for stability
        s1 = jnp.sum(jnp.sum(xc, axis=2, keepdims=True), axis=0, keepdims=True)
        s2 = jnp.sum(jnp.sum(xc * xc, axis=2, keepdims=True),
                     axis=0, keepdims=True)
        mean_sh = s1 * inv_m
        var = jnp.maximum(s2 * inv_m - mean_sh * mean_sh, 0.0)
        mean = rm + mean_sh

        a1 = w * jax.lax.rsqrt(var + eps)
        c1 = b - mean * a1
        a = (1.0 - s) * a0 + s * a1
        c = (1.0 - s) * c0 + s * c1

        z_ref[...] = (x * a + c).astype(z_ref.dtype)
        stats_ref[0:1] = mean
        stats_ref[1:2] = var
    return kernel


# ----------------------------------------------------------------------------
# pallas_call wrappers.
# ----------------------------------------------------------------------------
def _row_stats(x2, rm_rows, tr, thw):
    """Per-row shifted sum / sum-of-squares over (R, HW)."""
    R, HW = x2.shape
    grid = (pl.cdiv(R, tr), HW // thw)
    esz = x2.dtype.itemsize
    cost = pl.CostEstimate(flops=4 * R * HW, transcendentals=0,
                           bytes_accessed=R * HW * esz + 12 * R)
    return pl.pallas_call(
        _stats_kernel,
        out_shape=(jax.ShapeDtypeStruct((R, 1), jnp.float32),
                   jax.ShapeDtypeStruct((R, 1), jnp.float32)),
        grid=grid,
        in_specs=[pl.BlockSpec((tr, thw), lambda i, j: (i, j)),
                  pl.BlockSpec((tr, 1), lambda i, j: (i, 0))],
        out_specs=(pl.BlockSpec((tr, 1), lambda i, j: (i, 0)),
                   pl.BlockSpec((tr, 1), lambda i, j: (i, 0))),
        compiler_params=pltpu.CompilerParams(
            dimension_semantics=("parallel", "arbitrary"),
            vmem_limit_bytes=_VMEM_LIMIT),
        cost_estimate=cost,
    )(x2, rm_rows)


def _apply_rows(x2, ac_rows, tr, thw):
    """Elementwise z = a*x + c over (R, HW) tiles; both grid axes parallel."""
    R, HW = x2.shape
    grid = (pl.cdiv(R, tr), HW // thw)
    esz = x2.dtype.itemsize
    cost = pl.CostEstimate(flops=2 * R * HW, transcendentals=0,
                           bytes_accessed=2 * R * HW * esz + 8 * R)
    return pl.pallas_call(
        _apply_kernel,
        out_shape=jax.ShapeDtypeStruct((R, HW), x2.dtype),
        grid=grid,
        in_specs=[pl.BlockSpec((tr, thw), lambda i, j: (i, j)),
                  pl.BlockSpec((tr, 2), lambda i, j: (i, 0))],
        out_specs=pl.BlockSpec((tr, thw), lambda i, j: (i, j)),
        compiler_params=pltpu.CompilerParams(
            dimension_semantics=("parallel", "parallel"),
            vmem_limit_bytes=_VMEM_LIMIT),
        cost_estimate=cost,
    )(x2, ac_rows)


def _fused_train(x3, params, inv_m):
    """Single-shot fused stats + apply (whole x in VMEM, no grid)."""
    N, C, HW = x3.shape
    esz = x3.dtype.itemsize
    cost = pl.CostEstimate(flops=8 * N * C * HW, transcendentals=2 * C,
                           bytes_accessed=2 * N * C * HW * esz + 32 * C)
    return pl.pallas_call(
        _make_fused_kernel(inv_m, EPS),
        out_shape=(jax.ShapeDtypeStruct((N, C, HW), x3.dtype),
                   jax.ShapeDtypeStruct((2, C, 1), jnp.float32)),
        compiler_params=pltpu.CompilerParams(vmem_limit_bytes=_VMEM_LIMIT),
        cost_estimate=cost,
    )(x3, params)


# ----------------------------------------------------------------------------
# Public forward.
# ----------------------------------------------------------------------------
@functools.partial(jax.jit,
                   static_argnames=("training", "momentum", "force_tiled"))
def stoch_norm_2d(x_nchw, running_mean, running_var, weight, bias, s_mask,
                  training=True, momentum=0.1, force_tiled=False):
    """StochNorm2d forward.

    Returns (z, new_running_mean, new_running_var).  The running-stat EMA
    that F.batch_norm(training=True) performs in place is returned as new
    arrays (unbiased variance); eval mode returns the stats unchanged.
    """
    N, C, H, W = x_nchw.shape
    HW = H * W
    R = N * C
    M = N * HW
    esz = jnp.dtype(x_nchw.dtype).itemsize

    rm = running_mean.astype(jnp.float32)
    rv = running_var.astype(jnp.float32)
    w = weight.astype(jnp.float32)
    b = bias.astype(jnp.float32)

    # z0 path folded into a per-channel affine: z0 = a0*x + c0.
    a0 = w * jax.lax.rsqrt(rv + EPS)
    c0 = b - rm * a0

    x2 = x_nchw.reshape(R, HW)        # free NCHW view: rows=(n,c), lanes=H*W

    def tiles(budget):
        thw = _pick_hw_tile(HW, max(1, budget // (8 * esz)))
        tr = _pick_row_tile(R, max(1, budget // (thw * esz)))
        return tr, thw

    if training:
        x_f32_bytes = N * C * HW * 4
        use_fused = (not force_tiled) and (x_f32_bytes <= _FUSED_X_F32_BYTES)

        if use_fused:
            # Single pass: stats + per-channel math + FMA in one kernel.
            params = jnp.stack(
                [a0, c0, s_mask.astype(jnp.float32), rm, w, b],
                axis=0).reshape(6, C, 1).astype(jnp.float32)
            x3 = x_nchw.reshape(N, C, HW)
            z3, stats = _fused_train(x3, params, 1.0 / M)
            mean = stats[0, :, 0]
            var = stats[1, :, 0]
            z = z3.reshape(N, C, H, W)
        else:
            # Two-pass tiled path for large activations.
            tr_s, thw_s = tiles(_STATS_BLOCK_BYTES)
            rm_rows = jnp.broadcast_to(rm[None, :], (N, C)).reshape(R, 1)
            s1_rows, s2_rows = _row_stats(x2, rm_rows, tr_s, thw_s)
            s1 = jnp.sum(s1_rows.reshape(N, C), axis=0)   # per-channel fold
            s2 = jnp.sum(s2_rows.reshape(N, C), axis=0)
            mean_sh = s1 / M
            mean = rm + mean_sh
            var = jnp.maximum(s2 / M - mean_sh * mean_sh, 0.0)

            a1 = w * jax.lax.rsqrt(var + EPS)
            c1 = b - mean * a1
            s = s_mask.astype(jnp.float32)
            a = (1.0 - s) * a0 + s * a1
            c = (1.0 - s) * c0 + s * c1

            a_rows = jnp.broadcast_to(a[None, :], (N, C)).reshape(R)
            c_rows = jnp.broadcast_to(c[None, :], (N, C)).reshape(R)
            ac_rows = jnp.stack([a_rows, c_rows], axis=1)  # (R, 2) f32

            tr_a, thw_a = tiles(_APPLY_BLOCK_BYTES)
            z = _apply_rows(x2, ac_rows, tr_a, thw_a).reshape(N, C, H, W)

        unbiased = var * (M / max(M - 1, 1))
        new_rm = (1.0 - momentum) * rm + momentum * mean
        new_rv = (1.0 - momentum) * rv + momentum * unbiased
        return z, new_rm, new_rv

    # Eval mode: z = z0 only; single apply pass, running stats unchanged.
    a_rows = jnp.broadcast_to(a0[None, :], (N, C)).reshape(R)
    c_rows = jnp.broadcast_to(c0[None, :], (N, C)).reshape(R)
    ac_rows = jnp.stack([a_rows, c_rows], axis=1)
    tr_a, thw_a = tiles(_APPLY_BLOCK_BYTES)
    z = _apply_rows(x2, ac_rows, tr_a, thw_a).reshape(N, C, H, W)
    return z, rm, rv


# ----------------------------------------------------------------------------
# Pure-JAX reference and self-test.
# ----------------------------------------------------------------------------
def _reference(x, rm, rv, w, b, s, momentum=0.1):
    rm_ = rm.reshape(1, -1, 1, 1)
    rv_ = rv.reshape(1, -1, 1, 1)
    w_ = w.reshape(1, -1, 1, 1)
    b_ = b.reshape(1, -1, 1, 1)
    s_ = s.reshape(1, -1, 1, 1)
    z0 = (x - rm_) / jnp.sqrt(rv_ + EPS) * w_ + b_
    mean = jnp.mean(x, axis=(0, 2, 3), keepdims=True)
    var = jnp.mean((x - mean) ** 2, axis=(0, 2, 3), keepdims=True)
    z1 = (x - mean) / jnp.sqrt(var + EPS) * w_ + b_
    z = (1.0 - s_) * z0 + s_ * z1
    M = x.shape[0] * x.shape[2] * x.shape[3]
    new_rm = (1.0 - momentum) * rm + momentum * mean.reshape(-1)
    new_rv = (1.0 - momentum) * rv + momentum * (var.reshape(-1) * M / (M - 1))
    return z, new_rm, new_rv


if __name__ == "__main__":
    N, C, H, W = 2, 4, 16, 16

    key = jax.random.PRNGKey(0)
    kx, kw, ks = jax.random.split(key, 3)

    x = jax.random.normal(kx, (N, C, H, W), jnp.float32)

    # reset_parameters(): running_mean.zero_(), running_var.fill_(1),
    # weight.uniform_(), bias.zero_().
    running_mean = jnp.zeros((C,), jnp.float32)
    running_var = jnp.ones((C,), jnp.float32)
    weight = jax.random.uniform(kw, (C,), jnp.float32)
    bias = jnp.zeros((C,), jnp.float32)

    # TODO(synk): the module draws s from np.random.binomial each forward on
    # the host; here the per-channel Bernoulli(0.5) mask is an explicit input.
    s_mask = jax.random.bernoulli(ks, 0.5, (C,)).astype(jnp.float32)

    z_ref, rm_ref, rv_ref = _reference(x, running_mean, running_var, weight,
                                       bias, s_mask)

    # Training mode (fused single-pass path at this size).
    z, new_rm, new_rv = stoch_norm_2d(x, running_mean, running_var, weight,
                                      bias, s_mask, training=True)
    z = jax.block_until_ready(z)
    assert z.shape == (N, C, H, W)
    assert jnp.allclose(z, z_ref, atol=1e-4, rtol=1e-4), "fused z mismatch"
    assert jnp.allclose(new_rm, rm_ref, atol=1e-5, rtol=1e-5), "running_mean"
    assert jnp.allclose(new_rv, rv_ref, atol=1e-5, rtol=1e-5), "running_var"

    # Training mode, two-pass tiled path (same semantics, exercised directly).
    z_t, rm_t, rv_t = stoch_norm_2d(x, running_mean, running_var, weight,
                                    bias, s_mask, training=True,
                                    force_tiled=True)
    z_t = jax.block_until_ready(z_t)
    assert jnp.allclose(z_t, z_ref, atol=1e-4, rtol=1e-4), "tiled z mismatch"
    assert jnp.allclose(rm_t, rm_ref, atol=1e-5, rtol=1e-5), "tiled rm"
    assert jnp.allclose(rv_t, rv_ref, atol=1e-5, rtol=1e-5), "tiled rv"

    # Eval mode (z = z0 only; no stats pass, no EMA update).
    z_eval, _, _ = stoch_norm_2d(x, running_mean, running_var, weight, bias,
                                 s_mask, training=False)
    z_eval = jax.block_until_ready(z_eval)
    rm4 = running_mean.reshape(1, C, 1, 1)
    rv4 = running_var.reshape(1, C, 1, 1)
    z0_ref = ((x - rm4) / jnp.sqrt(rv4 + EPS) * weight.reshape(1, C, 1, 1)
              + bias.reshape(1, C, 1, 1))
    assert jnp.allclose(z_eval, z0_ref, atol=1e-4, rtol=1e-4), "eval mismatch"

    print("KERNEL_OK")
</pallas_src>

<mosaic_0001>
module attributes {stable_mosaic.version = 11 : i64} {
  func.func @kernel(%arg0: memref<2x4x256xf32, #tpu.memory_space<vmem>>, %arg1: memref<6x4x1xf32, #tpu.memory_space<vmem>>, %arg2: memref<2x4x256xf32, #tpu.memory_space<vmem>>, %arg3: memref<2x4x1xf32, #tpu.memory_space<vmem>>) attributes {dimension_semantics = [], scalar_prefetch = 0 : i64, scratch_operands = 0 : i64, tpu.core_type = #tpu.core_type<tc>} {
    %c0 = arith.constant 0 : index
    %c0_0 = arith.constant 0 : index
    %c0_1 = arith.constant 0 : index
    %0 = vector.load %arg1[%c0, %c0_0, %c0_1] : memref<6x4x1xf32, #tpu.memory_space<vmem>>, vector<6x4x1xf32>
    %1 = vector.extract_strided_slice %0 {offsets = [0, 0, 0], sizes = [1, 4, 1], strides = [1, 1, 1]} : vector<6x4x1xf32> to vector<1x4x1xf32>
    %2 = vector.extract_strided_slice %0 {offsets = [1, 0, 0], sizes = [1, 4, 1], strides = [1, 1, 1]} : vector<6x4x1xf32> to vector<1x4x1xf32>
    %3 = vector.extract_strided_slice %0 {offsets = [2, 0, 0], sizes = [1, 4, 1], strides = [1, 1, 1]} : vector<6x4x1xf32> to vector<1x4x1xf32>
    %4 = vector.extract_strided_slice %0 {offsets = [3, 0, 0], sizes = [1, 4, 1], strides = [1, 1, 1]} : vector<6x4x1xf32> to vector<1x4x1xf32>
    %5 = vector.extract_strided_slice %0 {offsets = [4, 0, 0], sizes = [1, 4, 1], strides = [1, 1, 1]} : vector<6x4x1xf32> to vector<1x4x1xf32>
    %6 = vector.extract_strided_slice %0 {offsets = [5, 0, 0], sizes = [1, 4, 1], strides = [1, 1, 1]} : vector<6x4x1xf32> to vector<1x4x1xf32>
    %c0_2 = arith.constant 0 : index
    %c0_3 = arith.constant 0 : index
    %c0_4 = arith.constant 0 : index
    %7 = vector.load %arg0[%c0_2, %c0_3, %c0_4] : memref<2x4x256xf32, #tpu.memory_space<vmem>>, vector<2x4x256xf32>
    %8 = vector.broadcast %4 : vector<1x4x1xf32> to vector<2x4x256xf32>
    %9 = arith.subf %7, %8 : vector<2x4x256xf32>
    %cst = arith.constant dense<0.000000e+00> : vector<2x4xf32>
    %10 = vector.multi_reduction <add>, %9, %cst [2] : vector<2x4x256xf32> to vector<2x4xf32>
    %11 = vector.shape_cast %10 : vector<2x4xf32> to vector<2x4x1xf32>
    %cst_5 = arith.constant dense<0.000000e+00> : vector<4x1xf32>
    %12 = vector.multi_reduction <add>, %11, %cst_5 [0] : vector<2x4x1xf32> to vector<4x1xf32>
    %13 = vector.shape_cast %12 : vector<4x1xf32> to vector<1x4x1xf32>
    %14 = arith.mulf %9, %9 : vector<2x4x256xf32>
    %cst_6 = arith.constant dense<0.000000e+00> : vector<2x4xf32>
    %15 = vector.multi_reduction <add>, %14, %cst_6 [2] : vector<2x4x256xf32> to vector<2x4xf32>
    %16 = vector.shape_cast %15 : vector<2x4xf32> to vector<2x4x1xf32>
    %cst_7 = arith.constant dense<0.000000e+00> : vector<4x1xf32>
    %17 = vector.multi_reduction <add>, %16, %cst_7 [0] : vector<2x4x1xf32> to vector<4x1xf32>
    %18 = vector.shape_cast %17 : vector<4x1xf32> to vector<1x4x1xf32>
    %cst_8 = arith.constant 0.001953125 : f32
    %19 = vector.broadcast %cst_8 : f32 to vector<1x4x1xf32>
    %20 = arith.mulf %13, %19 : vector<1x4x1xf32>
    %cst_9 = arith.constant 0.001953125 : f32
    %21 = vector.broadcast %cst_9 : f32 to vector<1x4x1xf32>
    %22 = arith.mulf %18, %21 : vector<1x4x1xf32>
    %23 = arith.mulf %20, %20 : vector<1x4x1xf32>
    %24 = arith.subf %22, %23 : vector<1x4x1xf32>
    %cst_10 = arith.constant 0.000000e+00 : f32
    %25 = vector.broadcast %cst_10 : f32 to vector<1x4x1xf32>
    %26 = arith.maximumf %24, %25 : vector<1x4x1xf32>
    %27 = arith.addf %4, %20 : vector<1x4x1xf32>
    %cst_11 = arith.constant 9.99999974E-6 : f32
    %28 = vector.broadcast %cst_11 : f32 to vector<1x4x1xf32>
    %29 = arith.addf %26, %28 : vector<1x4x1xf32>
    %30 = math.rsqrt %29 : vector<1x4x1xf32>
    %31 = arith.mulf %5, %30 : vector<1x4x1xf32>
    %32 = arith.mulf %27, %31 : vector<1x4x1xf32>
    %33 = arith.subf %6, %32 : vector<1x4x1xf32>
    %cst_12 = arith.constant 1.000000e+00 : f32
    %34 = vector.broadcast %cst_12 : f32 to vector<1x4x1xf32>
    %35 = arith.subf %34, %3 : vector<1x4x1xf32>
    %36 = arith.mulf %35, %1 : vector<1x4x1xf32>
    %37 = arith.mulf %3, %31 : vector<1x4x1xf32>
    %38 = arith.addf %36, %37 : vector<1x4x1xf32>
    %cst_13 = arith.constant 1.000000e+00 : f32
    %39 = vector.broadcast %cst_13 : f32 to vector<1x4x1xf32>
    %40 = arith.subf %39, %3 : vector<1x4x1xf32>
    %41 = arith.mulf %40, %2 : vector<1x4x1xf32>
    %42 = arith.mulf %3, %33 : vector<1x4x1xf32>
    %43 = arith.addf %41, %42 : vector<1x4x1xf32>
    %44 = vector.broadcast %38 : vector<1x4x1xf32> to vector<2x4x256xf32>
    %45 = arith.mulf %7, %44 : vector<2x4x256xf32>
    %46 = vector.broadcast %43 : vector<1x4x1xf32> to vector<2x4x256xf32>
    %47 = arith.addf %45, %46 : vector<2x4x256xf32>
    %c0_14 = arith.constant 0 : index
    %c0_15 = arith.constant 0 : index
    %c0_16 = arith.constant 0 : index
    %48 = vector.load %arg2[%c0_14, %c0_15, %c0_16] : memref<2x4x256xf32, #tpu.memory_space<vmem>>, vector<2x4x256xf32>
    tpu.vector_store %arg2[%c0_14, %c0_15, %c0_16], %47 {strides = array<i32>} : memref<2x4x256xf32, #tpu.memory_space<vmem>>, vector<2x4x256xf32>,
    %c0_17 = arith.constant 0 : index
    %c0_18 = arith.constant 0 : index
    %c0_19 = arith.constant 0 : index
    %49 = vector.load %arg3[%c0_17, %c0_18, %c0_19] : memref<2x4x1xf32, #tpu.memory_space<vmem>>, vector<1x4x1xf32>
    tpu.vector_store %arg3[%c0_17, %c0_18, %c0_19], %27 {strides = array<i32>} : memref<2x4x1xf32, #tpu.memory_space<vmem>>, vector<1x4x1xf32>,
    %c1 = arith.constant 1 : index
    %c0_20 = arith.constant 0 : index
    %c0_21 = arith.constant 0 : index
    %50 = vector.load %arg3[%c1, %c0_20, %c0_21] : memref<2x4x1xf32, #tpu.memory_space<vmem>>, vector<1x4x1xf32>
    tpu.vector_store %arg3[%c1, %c0_20, %c0_21], %26 {strides = array<i32>} : memref<2x4x1xf32, #tpu.memory_space<vmem>>, vector<1x4x1xf32>,
    return
  }
}

</mosaic_0001>

<bundles_post_ra>
// kernel: stoch_norm_2d.1
= control target key start
LH: loop header
LB: loop body
LE: loop exit
PB: predicated region body
PF: predicated region fallthrough
CT: control target
= control target key end

     0   :  { %v143_v0 = vmov 0   ;;  %v144_v2 = vmov 839922192   ;;  %v28_v4 = vlaneseq  ;;  %vm41_vm0 = vcmask 1043456   ;;  %s226_s1 = inlined_call_operand.vmem [shape: f32[6,4,1], index: 1, kind: input, shape index: {}]   ;;  %s227_s0 = inlined_call_operand.vmem [shape: f32[2,4,256], index: 0, kind: input, shape index: {}]   ;;  %s228_s3 = inlined_call_operand.vmem [shape: f32[2,4,1], index: 3, kind: output, shape index: {1}]   ;;  %s229_s2 = inlined_call_operand.vmem [shape: f32[2,4,256], index: 2, kind: output, shape index: {0}]  }
   0x1   :  { %139 = vset.pattern.permute.xlu0 %v143_v0  ;;  %v16_v1 = vld [vmem:[%s226_s1 + $0xc] sm:$0xf]  ;;  %140 = vset.pattern.permute.xlu1 %v143_v0  ;;  %v26_v3 = vunpack.c.l.s4 %v144_v2  ;;  %v173_v9 = vld [vmem:[%s227_s0] sm:$0xff]  ;;  %vm124_vm1 = vcmask 3072   ;;  %v15_v49 = vld [vmem:[%s226_s1 + $0x8] sm:$0xf] }
   0x2   :  { %23 = vperm.xlu0 %139, %v16_v1   ;;  %v29_v6 = vshrl.u32 %v28_v4, 7  ;;  %v178_v10 = vld [vmem:[%s227_s0 + $0x8] sm:$0xff]  ;;  %v87_v50 = vsub.f32 1.0, %v15_v49  ;;  %v13_v51 = vld [vmem:[%s226_s1] sm:$0xf] }
   0x3   :  { %v27_v5 = vunpack.c.0.s8 %v26_v3  ;;  %v17_v52 = vld [vmem:[%s226_s1 + $0x10] sm:$0xf]  ;;  %v14_v56 = vld [vmem:[%s226_s1 + $0x4] sm:$0xf]  ;;  %v18_v57 = vld [vmem:[%s226_s1 + $0x14] sm:$0xf] }
   0x4   :  { %v88_v55 = vmul.f32 %v87_v50, %v13_v51  ;;  %v91_v62 = vmul.f32 %v87_v50, %v14_v56 }
   0x5   :  { %v168_v7 = vsub.s32 %v27_v5, %v29_v6 }
  0x81   :  { %v24_v8 = vpop.permute.xlu0 %23 }
  0x82   :  { %v31_v11 = vrot.slane %v24_v8, %v168_v7 }
  0x84   :  { %v33_v12 = vsub.f32 %v173_v9, %v31_v11  ;;  %v34_v13 = vsub.f32 %v178_v10, %v31_v11 }
  0x86   :  { %v38_v14 = vcombine.high %v34_v13, %v34_v13  ;;  %v37_v15 = vcombine.high %v33_v12, %v33_v12  ;;  %v55_v16 = vmul.f32 %v33_v12, %v33_v12  ;;  %v56_v17 = vmul.f32 %v34_v13, %v34_v13 }
  0x87   :  { %v47_v18 = vsel %vm41_vm0, %v34_v13, 0.0  ;;  %v42_v20 = vsel %vm41_vm0, %v33_v12, 0.0 }
  0x88   :  { %v48_v19 = vsel %vm41_vm0, %v38_v14, 0.0  ;;  %v43_v21 = vsel %vm41_vm0, %v37_v15, 0.0  ;;  %v59_v24 = vcombine.high %v55_v16, %v55_v16  ;;  %v60_v25 = vcombine.high %v56_v17, %v56_v17 }
  0x89   :  { %v49_v22 = vadd.f32 %v48_v19, %v47_v18  ;;  %v44_v23 = vadd.f32 %v43_v21, %v42_v20  ;;  %v63_v27 = vsel %vm41_vm0, %v55_v16, 0.0  ;;  %v68_v30 = vsel %vm41_vm0, %v56_v17, 0.0 }
  0x8a   :  { %v64_v26 = vsel %vm41_vm0, %v59_v24, 0.0  ;;  %v69_v29 = vsel %vm41_vm0, %v60_v25, 0.0 }
  0x8b   :  { %50 = vadd.xlane.f32.xlu1 %v49_v22  ;;  %45 = vadd.xlane.f32.xlu0 %v44_v23  ;;  %v65_v28 = vadd.f32 %v64_v26, %v63_v27  ;;  %v70_v31 = vadd.f32 %v69_v29, %v68_v30 }
  0x8f   :  { %66 = vadd.xlane.f32.xlu1 %v65_v28 }
  0x93   :  { %71 = vadd.xlane.f32.xlu1 %v70_v31 }
 0x118   :  { %v51_v32 = vpop.xlane.xlu1 %50  ;;  %v46_v33 = vpop.xlane.xlu0 %45 }
 0x119   :  { %v53_v34 = vsel %vm41_vm0, %v51_v32, 0.0  ;;  %v52_v35 = vsel %vm41_vm0, %v46_v33, 0.0 }
 0x11a   :  { %v54_v36 = vadd.f32 %v53_v34, %v52_v35 }
 0x11c   :  { %v76_v37 = vmul.f32 0.001953125, %v54_v36  ;;  %v67_v38 = vpop.xlane.xlu1 %66 }
 0x11d   :  { %v73_v41 = vsel %vm41_vm0, %v67_v38, 0.0 }
 0x11e   :  { %v81_v39 = vadd.f32 %v76_v37, %v16_v1  ;;  %v78_v44 = vmul.f32 %v76_v37, %v76_v37 }
 0x120   :  { %125 = vst.msk [vmem:[%s228_s3] sm:$0xf] %vm124_vm1, %v81_v39  ;;  %v72_v40 = vpop.xlane.xlu1 %71 }
 0x121   :  { %v74_v42 = vsel %vm41_vm0, %v72_v40, 0.0 }
 0x122   :  { %v75_v43 = vadd.f32 %v74_v42, %v73_v41 }
 0x124   :  { %v77_v45 = vmul.f32 0.001953125, %v75_v43 }
 0x126   :  { %v79_v46 = vsub.f32 %v77_v45, %v78_v44 }
 0x128   :  { %v80_v47 = vmax.f32 %v79_v46, 0.0 }
 0x12a   :  { %v82_v48 = vadd.f32 1e-05, %v80_v47  ;;  %136 = vst.msk [vmem:[%s228_s3 + $0x4] sm:$0xf] %vm124_vm1, %v80_v47 }
 0x12c   :  { %141 = vrsqrt.f32 %v82_v48 }
 0x136   :  { %v142_v53 = vpop.eup %141 }
 0x137   :  { %v84_v54 = vmul.f32 %v142_v53, %v17_v52 }
 0x139   :  { %v89_v58 = vmul.f32 %v84_v54, %v15_v49  ;;  %v85_v59 = vmul.f32 %v84_v54, %v81_v39 }
 0x13b   :  { %v90_v60 = vadd.f32 %v89_v58, %v88_v55  ;;  %v86_v61 = vsub.f32 %v18_v57, %v85_v59 }
 0x13d   :  { %96 = vperm.xlu1 %140, %v90_v60   ;;  %v92_v63 = vmul.f32 %v86_v61, %v15_v49 }
 0x13f   :  { %v93_v0 = vadd.f32 %v92_v63, %v91_v62 }
 0x141   :  { %110 = vperm.xlu1 %140, %v93_v0  }
 0x1bc   :  { %v97_v1 = vpop.permute.xlu1 %96 }
 0x1bd   :  { %v104_v2 = vrot.slane %v97_v1, %v168_v7 }
 0x1bf   :  { %v106_v4 = vmul.f32 %v104_v2, %v173_v9  ;;  %v107_v5 = vmul.f32 %v104_v2, %v178_v10 }
 0x1c0   :  { %v111_v3 = vpop.permute.xlu1 %110 }
 0x1c1   :  { %v118_v6 = vrot.slane %v111_v3, %v168_v7 }
 0x1c3   :  { %v120_v8 = vadd.f32 %v118_v6, %v106_v4  ;;  %v121_v11 = vadd.f32 %v118_v6, %v107_v5 }
 0x1c5   :  { %122 = vst [vmem:[%s229_s2] sm:$0xff] %v120_v8  ;;  %123 = vst [vmem:[%s229_s2 + $0x8] sm:$0xff] %v121_v11 }

</bundles_post_ra>
